<compile_context>
chip_gen: v5e
topology: v5e:2x2
jax: 0.10.0
libtpu: 0.0.40
codegen_flags: <defaults>
</compile_context>

<pallas_src>
import jax
import jax.numpy as jnp
from jax.experimental import pallas as pl
from jax.experimental.pallas import tpu as pltpu

EPS = 1e-5

# MXU operand dtype.  Keep f32 for tight (1e-4) agreement with the reference.
MXU_DTYPE = jnp.float32


def _group_broadcast_sum(v, width, cout):
    """v: (1, W*Cout) per-lane column sums.  Returns (1, W*Cout) where every
    lane holds the total of its channel group {j : j % Cout == c}, i.e. the
    per-channel sum already broadcast back across the W lane positions."""
    lanes = width * cout
    if (width & (width - 1)) == 0:
        # log2(W) lane rotations on the XLU; modular wraparound stays inside
        # each channel group because Cout divides W*Cout.
        shift = cout
        while shift < lanes:
            v = v + pltpu.roll(v, shift=shift, axis=1)
            shift *= 2
        return v
    # Non-power-of-two W fallback: 0/1 group matrix built in-kernel from iota
    # (no HBM->VMEM DMA), applied with one small dot.
    i_idx = jax.lax.broadcasted_iota(jnp.int32, (lanes, lanes), 0)
    j_idx = jax.lax.broadcasted_iota(jnp.int32, (lanes, lanes), 1)
    group = ((i_idx % cout) == (j_idx % cout)).astype(v.dtype)
    return jnp.dot(v, group, preferred_element_type=jnp.float32)


def _conv_bn_relu(x, w_ref, gamma, beta, mask_top, mask_bot, width, cout, inv_n):
    """Conv3x3(pad=1, bias folded away) -> training-mode BatchNorm2d -> ReLU.

    x:        (N*H, W*Cin) lane-dense activation slab.
    w_ref:    Ref (3, W*Cin, W*Cout), banded weight block per kernel row dy.
    gamma, beta: (1, W*Cout), already tiled per lane.
    mask_top/mask_bot: (N*H, 1) bool, False on the first / last row of each image.
    """
    nh = x.shape[0]
    # H-direction taps: whole-slab sublane rotations + boundary masks implement
    # the zero padding.  No concatenation, no per-batch Python loop.
    x_up = jnp.where(mask_top, pltpu.roll(x, shift=1, axis=0), 0.0)       # x[r-1]
    x_dn = jnp.where(mask_bot, pltpu.roll(x, shift=nh - 1, axis=0), 0.0)  # x[r+1]

    def mm(a, w):
        return jnp.dot(a.astype(MXU_DTYPE), w.astype(MXU_DTYPE),
                       preferred_element_type=jnp.float32)

    # One accumulating f32 chain; the W taps + W zero padding live inside the
    # banded weight blocks, so no im2col copy of the activation is built.
    acc = mm(x, w_ref[1])
    acc = acc + mm(x_up, w_ref[0])
    acc = acc + mm(x_dn, w_ref[2])

    # Training-mode BatchNorm2d, two-pass (mean, then centered variance).
    mean = _group_broadcast_sum(jnp.sum(acc, axis=0, keepdims=True),
                                width, cout) * inv_n
    d = acc - mean
    var = _group_broadcast_sum(jnp.sum(d * d, axis=0, keepdims=True),
                               width, cout) * inv_n
    scale = gamma * jax.lax.rsqrt(var + EPS)
    return jnp.maximum(d * scale + beta, 0.0)                # fused BN + ReLU


def _banded_weight(w_hwio, width):
    """Fold the width-direction taps (and W zero padding) of a 3x3 conv into a
    block-banded matrix per kernel row: shape (3, W*Cin, W*Cout); rows ordered
    (w_in, ci), columns ordered (w_out, co).

    TODO(synk): for production W*C the band is quadratic in W and only 3/W
    dense -- switch to per-tap dense (Cin, Cout) matmuls on an (N*H*W, Cin)
    layout instead of widening this matrix.
    """
    kh, kw, cin, cout = w_hwio.shape
    w_in = jnp.arange(width)[:, None]
    w_out = jnp.arange(width)[None, :]
    dx = w_in - w_out + (kw // 2)                      # tap index, padding folded in
    valid = (dx >= 0) & (dx < kw)
    g = w_hwio[:, jnp.clip(dx, 0, kw - 1), :, :]       # (kh, W_in, W_out, Cin, Cout)
    g = jnp.where(valid[None, :, :, None, None], g, 0.0)
    g = jnp.transpose(g, (0, 1, 3, 2, 4))              # (kh, W_in, Cin, W_out, Cout)
    return g.reshape(kh, width * cin, width * cout)


def double_conv(x_nchw, params):
    """Pallas implementation of DoubleConv.forward.  x_nchw: (N, Cin, H, W) f32."""
    w1, b1, g1, be1, w2, b2, g2, be2 = params          # w* are HWIO
    # Training-mode BatchNorm cancels the conv bias exactly (batch-mean
    # subtraction); eval-mode BN with running stats would need it reinstated.
    del b1, b2

    n, cin, height, width = x_nchw.shape
    cout = w1.shape[-1]
    nh = n * height
    lanes_out = width * cout

    # NCHW -> NHWC -> lane-dense (N*H, W*C) slab (layout-preserving reshape).
    # TODO(synk): at memory-bound production sizes keep NHWC end-to-end (or
    # fuse these transposes into producer/consumer) to avoid two extra HBM
    # round trips in the XLA wrapper.
    x_slab = jnp.transpose(x_nchw, (0, 2, 3, 1)).astype(jnp.float32)
    x_slab = x_slab.reshape(nh, width * cin)

    w1b = _banded_weight(w1.astype(jnp.float32), width)   # (3, W*Cin,  W*Cout)
    w2b = _banded_weight(w2.astype(jnp.float32), width)   # (3, W*Cout, W*Cout)

    # gamma/beta pre-tiled to lane width: no in-kernel channel broadcast.
    g1_l = jnp.tile(g1.astype(jnp.float32), width).reshape(1, lanes_out)
    be1_l = jnp.tile(be1.astype(jnp.float32), width).reshape(1, lanes_out)
    g2_l = jnp.tile(g2.astype(jnp.float32), width).reshape(1, lanes_out)
    be2_l = jnp.tile(be2.astype(jnp.float32), width).reshape(1, lanes_out)

    inv_n = 1.0 / float(n * height * width)

    def kernel(x_ref, w1_ref, w2_ref, g1_ref, be1_ref, g2_ref, be2_ref, o_ref):
        # Row-boundary masks, built once and shared by both conv blocks.
        row = jax.lax.broadcasted_iota(jnp.int32, (nh, 1), 0)
        h_in_img = row % height
        mask_top = h_in_img != 0
        mask_bot = h_in_img != (height - 1)

        h1 = _conv_bn_relu(x_ref[...], w1_ref, g1_ref[...], be1_ref[...],
                           mask_top, mask_bot, width, cout, inv_n)
        h2 = _conv_bn_relu(h1, w2_ref, g2_ref[...], be2_ref[...],
                           mask_top, mask_bot, width, cout, inv_n)
        # (N*H, W*Cout): unmasked, lane-dense, (8,128)-aligned output store.
        o_ref[...] = h2

    # Per-generation VMEM cap: never request more than ~80% of the device VMEM
    # (v7x: 64 MiB per TensorCore; v5e/v6e: 128 MiB).
    try:
        vmem_cap = int(getattr(pltpu.get_tpu_info(), "vmem_capacity_bytes",
                               64 << 20))
    except Exception:
        vmem_cap = 64 << 20
    f32_bytes = 4
    resident = (x_slab.size + w1b.size + w2b.size + 4 * lanes_out
                + nh * lanes_out)
    temporaries = 8 * nh * max(width * cin, lanes_out)
    requested = (2 * resident + temporaries) * f32_bytes
    vmem_limit = int(min(max(requested, 4 << 20), int(0.8 * vmem_cap)))

    # TODO(synk): for production N*H*W*C, grid over >=512-row blocks of the
    # slab (dimension_semantics=("parallel",)) with a two-pass BN (stats pass,
    # then normalize+ReLU pass) so BlockSpec double-buffering, MXU fill
    # (M >= 256 per dot) and v7x's second TensorCore are actually used; here
    # everything fits in VMEM and a grid would only add per-step overhead.
    out_slab = pl.pallas_call(
        kernel,
        out_shape=jax.ShapeDtypeStruct((nh, lanes_out), jnp.float32),
        in_specs=[pl.BlockSpec(memory_space=pltpu.MemorySpace.VMEM)] * 7,
        out_specs=pl.BlockSpec(memory_space=pltpu.MemorySpace.VMEM),
        compiler_params=pltpu.CompilerParams(vmem_limit_bytes=vmem_limit),
    )(x_slab, w1b, w2b, g1_l, be1_l, g2_l, be2_l)

    out_nhwc = out_slab.reshape(n, height, width, cout)
    return jnp.transpose(out_nhwc, (0, 3, 1, 2))        # NHWC -> NCHW


def reference(x_nchw, params):
    """Pure-JAX reference mirroring the PyTorch module (training-mode BN, with bias)."""
    w1, b1, g1, be1, w2, b2, g2, be2 = params

    def block(x, w_hwio, b, g, be):
        w_oihw = jnp.transpose(w_hwio, (3, 2, 0, 1))
        y = jax.lax.conv_general_dilated(
            x, w_oihw, window_strides=(1, 1), padding="SAME",
            dimension_numbers=("NCHW", "OIHW", "NCHW"))
        y = y + b[None, :, None, None]
        mean = jnp.mean(y, axis=(0, 2, 3), keepdims=True)
        var = jnp.mean((y - mean) ** 2, axis=(0, 2, 3), keepdims=True)
        y = g[None, :, None, None] * (y - mean) / jnp.sqrt(var + EPS) \
            + be[None, :, None, None]
        return jnp.maximum(y, 0.0)

    y = block(x_nchw, w1, b1, g1, be1)
    return block(y, w2, b2, g2, be2)


if __name__ == "__main__":
    N, C_IN, C_OUT, H, W = 2, 4, 8, 16, 16

    key = jax.random.PRNGKey(0)
    ks = jax.random.split(key, 9)
    x = jax.random.normal(ks[0], (N, C_IN, H, W), jnp.float32)

    # Deterministic synthetic parameters (shapes per nn.Conv2d / nn.BatchNorm2d).
    w1 = 0.2 * jax.random.normal(ks[1], (3, 3, C_IN, C_OUT), jnp.float32)   # HWIO
    b1 = 0.1 * jax.random.normal(ks[2], (C_OUT,), jnp.float32)
    g1 = 1.0 + 0.1 * jax.random.normal(ks[3], (C_OUT,), jnp.float32)
    be1 = 0.1 * jax.random.normal(ks[4], (C_OUT,), jnp.float32)
    w2 = 0.2 * jax.random.normal(ks[5], (3, 3, C_OUT, C_OUT), jnp.float32)  # HWIO
    b2 = 0.1 * jax.random.normal(ks[6], (C_OUT,), jnp.float32)
    g2 = 1.0 + 0.1 * jax.random.normal(ks[7], (C_OUT,), jnp.float32)
    be2 = 0.1 * jax.random.normal(ks[8], (C_OUT,), jnp.float32)
    params = (w1, b1, g1, be1, w2, b2, g2, be2)

    out = jax.jit(double_conv)(x, params)
    out = jax.block_until_ready(out)

    ref = reference(x, params)
    assert out.shape == (N, C_OUT, H, W), out.shape
    if not jnp.allclose(out, ref, rtol=1e-4, atol=1e-4):
        raise AssertionError(
            f"mismatch: max abs err {float(jnp.max(jnp.abs(out - ref)))}")
    print("KERNEL_OK")
</pallas_src>

<mosaic_0001>
module attributes {stable_mosaic.version = 11 : i64} {
  func.func @kernel(%arg0: memref<32x64xf32, #tpu.memory_space<vmem>>, %arg1: memref<3x64x128xf32, #tpu.memory_space<vmem>>, %arg2: memref<3x128x128xf32, #tpu.memory_space<vmem>>, %arg3: memref<1x128xf32, #tpu.memory_space<vmem>>, %arg4: memref<1x128xf32, #tpu.memory_space<vmem>>, %arg5: memref<1x128xf32, #tpu.memory_space<vmem>>, %arg6: memref<1x128xf32, #tpu.memory_space<vmem>>, %arg7: memref<32x128xf32, #tpu.memory_space<vmem>>) attributes {dimension_semantics = [], scalar_prefetch = 0 : i64, scratch_operands = 0 : i64, tpu.core_type = #tpu.core_type<tc>} {
    %0 = tpu.iota {dimensions = array<i32: 0>} : vector<32x1xi32>
    %c16_i32 = arith.constant 16 : i32
    %c0_i32 = arith.constant 0 : i32
    %1 = arith.cmpi eq, %c16_i32, %c0_i32 : i32
    %c1_i32 = arith.constant 1 : i32
    %2 = arith.select %1, %c1_i32, %c16_i32 : i32
    %3 = vector.broadcast %2 : i32 to vector<32x1xi32>
    %4 = arith.remsi %0, %3 : vector<32x1xi32>
    %c0_i32_0 = arith.constant 0 : i32
    %5 = vector.broadcast %c0_i32_0 : i32 to vector<32x1xi32>
    %6 = arith.cmpi ne, %4, %5 : vector<32x1xi32>
    %c0_i32_1 = arith.constant 0 : i32
    %7 = vector.broadcast %c0_i32_1 : i32 to vector<32x1xi32>
    %8 = arith.cmpi slt, %4, %7 : vector<32x1xi32>
    %c0_i32_2 = arith.constant 0 : i32
    %9 = arith.cmpi slt, %2, %c0_i32_2 : i32
    %10 = vector.broadcast %9 : i1 to vector<32x1xi1>
    %11 = vector.broadcast %10 : vector<32x1xi1> to vector<32x1xi1>
    %12 = arith.xori %8, %11 : vector<32x1xi1>
    %13 = arith.andi %12, %6 : vector<32x1xi1>
    %14 = vector.broadcast %2 : i32 to vector<32x1xi32>
    %15 = arith.addi %4, %14 : vector<32x1xi32>
    %16 = arith.select %13, %15, %4 : vector<32x1xi1>, vector<32x1xi32>
    %c0_i32_3 = arith.constant 0 : i32
    %17 = vector.broadcast %c0_i32_3 : i32 to vector<32x1xi32>
    %18 = arith.cmpi ne, %16, %17 : vector<32x1xi32>
    %c15_i32 = arith.constant 15 : i32
    %19 = vector.broadcast %c15_i32 : i32 to vector<32x1xi32>
    %20 = arith.cmpi ne, %16, %19 : vector<32x1xi32>
    %c0 = arith.constant 0 : index
    %c0_4 = arith.constant 0 : index
    %21 = vector.load %arg0[%c0, %c0_4] : memref<32x64xf32, #tpu.memory_space<vmem>>, vector<32x64xf32>
    %c0_5 = arith.constant 0 : index
    %c0_6 = arith.constant 0 : index
    %22 = vector.load %arg3[%c0_5, %c0_6] : memref<1x128xf32, #tpu.memory_space<vmem>>, vector<1x128xf32>
    %c0_7 = arith.constant 0 : index
    %c0_8 = arith.constant 0 : index
    %23 = vector.load %arg4[%c0_7, %c0_8] : memref<1x128xf32, #tpu.memory_space<vmem>>, vector<1x128xf32>
    %c1_i32_9 = arith.constant 1 : i32
    %24 = tpu.dynamic_rotate %21 by %c1_i32_9 dim 0 : vector<32x64xf32>, i32 -> vector<32x64xf32>
    %cst = arith.constant 0.000000e+00 : f32
    %25 = vector.shape_cast %18 : vector<32x1xi1> to vector<32x1xi1>
    %26 = vector.broadcast %25 : vector<32x1xi1> to vector<32x64xi1>
    %27 = vector.broadcast %cst : f32 to vector<32x64xf32>
    %28 = arith.select %26, %24, %27 : vector<32x64xi1>, vector<32x64xf32>
    %c31_i32 = arith.constant 31 : i32
    %29 = tpu.dynamic_rotate %21 by %c31_i32 dim 0 : vector<32x64xf32>, i32 -> vector<32x64xf32>
    %cst_10 = arith.constant 0.000000e+00 : f32
    %30 = vector.shape_cast %20 : vector<32x1xi1> to vector<32x1xi1>
    %31 = vector.broadcast %30 : vector<32x1xi1> to vector<32x64xi1>
    %32 = vector.broadcast %cst_10 : f32 to vector<32x64xf32>
    %33 = arith.select %31, %29, %32 : vector<32x64xi1>, vector<32x64xf32>
    %c1 = arith.constant 1 : index
    %c0_11 = arith.constant 0 : index
    %c0_12 = arith.constant 0 : index
    %34 = vector.load %arg1[%c1, %c0_11, %c0_12] : memref<3x64x128xf32, #tpu.memory_space<vmem>>, vector<1x64x128xf32>
    %35 = vector.shape_cast %34 : vector<1x64x128xf32> to vector<64x128xf32>
    %cst_13 = arith.constant dense<0.000000e+00> : vector<32x128xf32>
    %36 = tpu.matmul %21, %35, %cst_13 {dimension_numbers = #tpu.dot_dimension_numbers<[1], [0], [0], [1], [0, 0, 1, 1], [], []>} : vector<32x64xf32>, vector<64x128xf32>, vector<32x128xf32> -> vector<32x128xf32>
    %c0_14 = arith.constant 0 : index
    %c0_15 = arith.constant 0 : index
    %c0_16 = arith.constant 0 : index
    %37 = vector.load %arg1[%c0_14, %c0_15, %c0_16] : memref<3x64x128xf32, #tpu.memory_space<vmem>>, vector<1x64x128xf32>
    %38 = vector.shape_cast %37 : vector<1x64x128xf32> to vector<64x128xf32>
    %cst_17 = arith.constant dense<0.000000e+00> : vector<32x128xf32>
    %39 = tpu.matmul %28, %38, %cst_17 {dimension_numbers = #tpu.dot_dimension_numbers<[1], [0], [0], [1], [0, 0, 1, 1], [], []>} : vector<32x64xf32>, vector<64x128xf32>, vector<32x128xf32> -> vector<32x128xf32>
    %40 = arith.addf %36, %39 : vector<32x128xf32>
    %c2 = arith.constant 2 : index
    %c0_18 = arith.constant 0 : index
    %c0_19 = arith.constant 0 : index
    %41 = vector.load %arg1[%c2, %c0_18, %c0_19] : memref<3x64x128xf32, #tpu.memory_space<vmem>>, vector<1x64x128xf32>
    %42 = vector.shape_cast %41 : vector<1x64x128xf32> to vector<64x128xf32>
    %cst_20 = arith.constant dense<0.000000e+00> : vector<32x128xf32>
    %43 = tpu.matmul %33, %42, %cst_20 {dimension_numbers = #tpu.dot_dimension_numbers<[1], [0], [0], [1], [0, 0, 1, 1], [], []>} : vector<32x64xf32>, vector<64x128xf32>, vector<32x128xf32> -> vector<32x128xf32>
    %44 = arith.addf %40, %43 : vector<32x128xf32>
    %cst_21 = arith.constant dense<0.000000e+00> : vector<128xf32>
    %45 = vector.multi_reduction <add>, %44, %cst_21 [0] : vector<32x128xf32> to vector<128xf32>
    %46 = vector.shape_cast %45 : vector<128xf32> to vector<1x128xf32>
    %c8_i32 = arith.constant 8 : i32
    %47 = tpu.dynamic_rotate %46 by %c8_i32 dim 1 : vector<1x128xf32>, i32 -> vector<1x128xf32>
    %48 = arith.addf %46, %47 : vector<1x128xf32>
    %c16_i32_22 = arith.constant 16 : i32
    %49 = tpu.dynamic_rotate %48 by %c16_i32_22 dim 1 : vector<1x128xf32>, i32 -> vector<1x128xf32>
    %50 = arith.addf %48, %49 : vector<1x128xf32>
    %c32_i32 = arith.constant 32 : i32
    %51 = tpu.dynamic_rotate %50 by %c32_i32 dim 1 : vector<1x128xf32>, i32 -> vector<1x128xf32>
    %52 = arith.addf %50, %51 : vector<1x128xf32>
    %c64_i32 = arith.constant 64 : i32
    %53 = tpu.dynamic_rotate %52 by %c64_i32 dim 1 : vector<1x128xf32>, i32 -> vector<1x128xf32>
    %54 = arith.addf %52, %53 : vector<1x128xf32>
    %cst_23 = arith.constant 0.001953125 : f32
    %55 = vector.broadcast %cst_23 : f32 to vector<1x128xf32>
    %56 = arith.mulf %54, %55 : vector<1x128xf32>
    %57 = vector.broadcast %56 : vector<1x128xf32> to vector<32x128xf32>
    %58 = arith.subf %44, %57 : vector<32x128xf32>
    %59 = arith.mulf %58, %58 : vector<32x128xf32>
    %cst_24 = arith.constant dense<0.000000e+00> : vector<128xf32>
    %60 = vector.multi_reduction <add>, %59, %cst_24 [0] : vector<32x128xf32> to vector<128xf32>
    %61 = vector.shape_cast %60 : vector<128xf32> to vector<1x128xf32>
    %c8_i32_25 = arith.constant 8 : i32
    %62 = tpu.dynamic_rotate %61 by %c8_i32_25 dim 1 : vector<1x128xf32>, i32 -> vector<1x128xf32>
    %63 = arith.addf %61, %62 : vector<1x128xf32>
    %c16_i32_26 = arith.constant 16 : i32
    %64 = tpu.dynamic_rotate %63 by %c16_i32_26 dim 1 : vector<1x128xf32>, i32 -> vector<1x128xf32>
    %65 = arith.addf %63, %64 : vector<1x128xf32>
    %c32_i32_27 = arith.constant 32 : i32
    %66 = tpu.dynamic_rotate %65 by %c32_i32_27 dim 1 : vector<1x128xf32>, i32 -> vector<1x128xf32>
    %67 = arith.addf %65, %66 : vector<1x128xf32>
    %c64_i32_28 = arith.constant 64 : i32
    %68 = tpu.dynamic_rotate %67 by %c64_i32_28 dim 1 : vector<1x128xf32>, i32 -> vector<1x128xf32>
    %69 = arith.addf %67, %68 : vector<1x128xf32>
    %cst_29 = arith.constant 0.001953125 : f32
    %70 = vector.broadcast %cst_29 : f32 to vector<1x128xf32>
    %71 = arith.mulf %69, %70 : vector<1x128xf32>
    %cst_30 = arith.constant 9.99999974E-6 : f32
    %72 = vector.broadcast %cst_30 : f32 to vector<1x128xf32>
    %73 = arith.addf %71, %72 : vector<1x128xf32>
    %74 = math.rsqrt %73 : vector<1x128xf32>
    %75 = arith.mulf %22, %74 : vector<1x128xf32>
    %76 = vector.broadcast %75 : vector<1x128xf32> to vector<32x128xf32>
    %77 = arith.mulf %58, %76 : vector<32x128xf32>
    %78 = vector.broadcast %23 : vector<1x128xf32> to vector<32x128xf32>
    %79 = arith.addf %77, %78 : vector<32x128xf32>
    %cst_31 = arith.constant 0.000000e+00 : f32
    %80 = vector.broadcast %cst_31 : f32 to vector<32x128xf32>
    %81 = arith.maximumf %79, %80 : vector<32x128xf32>
    %c0_32 = arith.constant 0 : index
    %c0_33 = arith.constant 0 : index
    %82 = vector.load %arg5[%c0_32, %c0_33] : memref<1x128xf32, #tpu.memory_space<vmem>>, vector<1x128xf32>
    %c0_34 = arith.constant 0 : index
    %c0_35 = arith.constant 0 : index
    %83 = vector.load %arg6[%c0_34, %c0_35] : memref<1x128xf32, #tpu.memory_space<vmem>>, vector<1x128xf32>
    %c1_i32_36 = arith.constant 1 : i32
    %84 = tpu.dynamic_rotate %81 by %c1_i32_36 dim 0 : vector<32x128xf32>, i32 -> vector<32x128xf32>
    %cst_37 = arith.constant 0.000000e+00 : f32
    %85 = vector.shape_cast %18 : vector<32x1xi1> to vector<32x1xi1>
    %86 = vector.broadcast %85 : vector<32x1xi1> to vector<32x128xi1>
    %87 = vector.broadcast %cst_37 : f32 to vector<32x128xf32>
    %88 = arith.select %86, %84, %87 : vector<32x128xi1>, vector<32x128xf32>
    %c31_i32_38 = arith.constant 31 : i32
    %89 = tpu.dynamic_rotate %81 by %c31_i32_38 dim 0 : vector<32x128xf32>, i32 -> vector<32x128xf32>
    %cst_39 = arith.constant 0.000000e+00 : f32
    %90 = vector.shape_cast %20 : vector<32x1xi1> to vector<32x1xi1>
    %91 = vector.broadcast %90 : vector<32x1xi1> to vector<32x128xi1>
    %92 = vector.broadcast %cst_39 : f32 to vector<32x128xf32>
    %93 = arith.select %91, %89, %92 : vector<32x128xi1>, vector<32x128xf32>
    %c1_40 = arith.constant 1 : index
    %c0_41 = arith.constant 0 : index
    %c0_42 = arith.constant 0 : index
    %94 = vector.load %arg2[%c1_40, %c0_41, %c0_42] : memref<3x128x128xf32, #tpu.memory_space<vmem>>, vector<1x128x128xf32>
    %95 = vector.shape_cast %94 : vector<1x128x128xf32> to vector<128x128xf32>
    %cst_43 = arith.constant dense<0.000000e+00> : vector<32x128xf32>
    %96 = tpu.matmul %81, %95, %cst_43 {dimension_numbers = #tpu.dot_dimension_numbers<[1], [0], [0], [1], [0, 0, 1, 1], [], []>} : vector<32x128xf32>, vector<128x128xf32>, vector<32x128xf32> -> vector<32x128xf32>
    %c0_44 = arith.constant 0 : index
    %c0_45 = arith.constant 0 : index
    %c0_46 = arith.constant 0 : index
    %97 = vector.load %arg2[%c0_44, %c0_45, %c0_46] : memref<3x128x128xf32, #tpu.memory_space<vmem>>, vector<1x128x128xf32>
    %98 = vector.shape_cast %97 : vector<1x128x128xf32> to vector<128x128xf32>
    %cst_47 = arith.constant dense<0.000000e+00> : vector<32x128xf32>
    %99 = tpu.matmul %88, %98, %cst_47 {dimension_numbers = #tpu.dot_dimension_numbers<[1], [0], [0], [1], [0, 0, 1, 1], [], []>} : vector<32x128xf32>, vector<128x128xf32>, vector<32x128xf32> -> vector<32x128xf32>
    %100 = arith.addf %96, %99 : vector<32x128xf32>
    %c2_48 = arith.constant 2 : index
    %c0_49 = arith.constant 0 : index
    %c0_50 = arith.constant 0 : index
    %101 = vector.load %arg2[%c2_48, %c0_49, %c0_50] : memref<3x128x128xf32, #tpu.memory_space<vmem>>, vector<1x128x128xf32>
    %102 = vector.shape_cast %101 : vector<1x128x128xf32> to vector<128x128xf32>
    %cst_51 = arith.constant dense<0.000000e+00> : vector<32x128xf32>
    %103 = tpu.matmul %93, %102, %cst_51 {dimension_numbers = #tpu.dot_dimension_numbers<[1], [0], [0], [1], [0, 0, 1, 1], [], []>} : vector<32x128xf32>, vector<128x128xf32>, vector<32x128xf32> -> vector<32x128xf32>
    %104 = arith.addf %100, %103 : vector<32x128xf32>
    %cst_52 = arith.constant dense<0.000000e+00> : vector<128xf32>
    %105 = vector.multi_reduction <add>, %104, %cst_52 [0] : vector<32x128xf32> to vector<128xf32>
    %106 = vector.shape_cast %105 : vector<128xf32> to vector<1x128xf32>
    %c8_i32_53 = arith.constant 8 : i32
    %107 = tpu.dynamic_rotate %106 by %c8_i32_53 dim 1 : vector<1x128xf32>, i32 -> vector<1x128xf32>
    %108 = arith.addf %106, %107 : vector<1x128xf32>
    %c16_i32_54 = arith.constant 16 : i32
    %109 = tpu.dynamic_rotate %108 by %c16_i32_54 dim 1 : vector<1x128xf32>, i32 -> vector<1x128xf32>
    %110 = arith.addf %108, %109 : vector<1x128xf32>
    %c32_i32_55 = arith.constant 32 : i32
    %111 = tpu.dynamic_rotate %110 by %c32_i32_55 dim 1 : vector<1x128xf32>, i32 -> vector<1x128xf32>
    %112 = arith.addf %110, %111 : vector<1x128xf32>
    %c64_i32_56 = arith.constant 64 : i32
    %113 = tpu.dynamic_rotate %112 by %c64_i32_56 dim 1 : vector<1x128xf32>, i32 -> vector<1x128xf32>
    %114 = arith.addf %112, %113 : vector<1x128xf32>
    %cst_57 = arith.constant 0.001953125 : f32
    %115 = vector.broadcast %cst_57 : f32 to vector<1x128xf32>
    %116 = arith.mulf %114, %115 : vector<1x128xf32>
    %117 = vector.broadcast %116 : vector<1x128xf32> to vector<32x128xf32>
    %118 = arith.subf %104, %117 : vector<32x128xf32>
    %119 = arith.mulf %118, %118 : vector<32x128xf32>
    %cst_58 = arith.constant dense<0.000000e+00> : vector<128xf32>
    %120 = vector.multi_reduction <add>, %119, %cst_58 [0] : vector<32x128xf32> to vector<128xf32>
    %121 = vector.shape_cast %120 : vector<128xf32> to vector<1x128xf32>
    %c8_i32_59 = arith.constant 8 : i32
    %122 = tpu.dynamic_rotate %121 by %c8_i32_59 dim 1 : vector<1x128xf32>, i32 -> vector<1x128xf32>
    %123 = arith.addf %121, %122 : vector<1x128xf32>
    %c16_i32_60 = arith.constant 16 : i32
    %124 = tpu.dynamic_rotate %123 by %c16_i32_60 dim 1 : vector<1x128xf32>, i32 -> vector<1x128xf32>
    %125 = arith.addf %123, %124 : vector<1x128xf32>
    %c32_i32_61 = arith.constant 32 : i32
    %126 = tpu.dynamic_rotate %125 by %c32_i32_61 dim 1 : vector<1x128xf32>, i32 -> vector<1x128xf32>
    %127 = arith.addf %125, %126 : vector<1x128xf32>
    %c64_i32_62 = arith.constant 64 : i32
    %128 = tpu.dynamic_rotate %127 by %c64_i32_62 dim 1 : vector<1x128xf32>, i32 -> vector<1x128xf32>
    %129 = arith.addf %127, %128 : vector<1x128xf32>
    %cst_63 = arith.constant 0.001953125 : f32
    %130 = vector.broadcast %cst_63 : f32 to vector<1x128xf32>
    %131 = arith.mulf %129, %130 : vector<1x128xf32>
    %cst_64 = arith.constant 9.99999974E-6 : f32
    %132 = vector.broadcast %cst_64 : f32 to vector<1x128xf32>
    %133 = arith.addf %131, %132 : vector<1x128xf32>
    %134 = math.rsqrt %133 : vector<1x128xf32>
    %135 = arith.mulf %82, %134 : vector<1x128xf32>
    %136 = vector.broadcast %135 : vector<1x128xf32> to vector<32x128xf32>
    %137 = arith.mulf %118, %136 : vector<32x128xf32>
    %138 = vector.broadcast %83 : vector<1x128xf32> to vector<32x128xf32>
    %139 = arith.addf %137, %138 : vector<32x128xf32>
    %cst_65 = arith.constant 0.000000e+00 : f32
    %140 = vector.broadcast %cst_65 : f32 to vector<32x128xf32>
    %141 = arith.maximumf %139, %140 : vector<32x128xf32>
    %c0_66 = arith.constant 0 : index
    %c0_67 = arith.constant 0 : index
    %142 = vector.load %arg7[%c0_66, %c0_67] : memref<32x128xf32, #tpu.memory_space<vmem>>, vector<32x128xf32>
    tpu.vector_store %arg7[%c0_66, %c0_67], %141 {strides = array<i32>} : memref<32x128xf32, #tpu.memory_space<vmem>>, vector<32x128xf32>,
    return
  }
}

</mosaic_0001>

<bundles_post_ra>
// kernel: tile.23
= control target key start
LH: loop header
LB: loop body
LE: loop exit
PB: predicated region body
PF: predicated region fallthrough
CT: control target
= control target key end

     0   :  { %s28_s0 = inlined_call_operand.vmem [shape: f32[8], index: 0, kind: input, shape index: {}]   ;;  %s29_s1 = inlined_call_operand.vmem [shape: f32[16,8], index: 1, kind: output, shape index: {}]  }
   0x1   :  { %v4_v0 = vld [vmem:[%s28_s0] ss:$0 sm:$0xff] }
   0x2   :  { %5 = vst [vmem:[%s29_s1] sm:$0xff] %v4_v0 }
   0x3   :  { %8 = vst [vmem:[%s29_s1 + $0x8] sm:$0xff] %v4_v0 }

// kernel: tile.24
= control target key start
LH: loop header
LB: loop body
LE: loop exit
PB: predicated region body
PF: predicated region fallthrough
CT: control target
= control target key end

     0   :  { %s131_s10 = smov 120   ;;  %s132_s11 = smov 104   ;;  %vm3_vm0 = vcmask 64512   ;;  %vm9_vm1 = vcmask 1048512   ;;  %vm15_vm2 = vcmask 982912   ;;  %vm21_vm3 = vcmask 917312   ;;  %s207_s0 = inlined_call_operand.vmem [shape: f32[16,8], index: 0, kind: input, shape index: {}]   ;;  %s208_s1 = inlined_call_operand.vmem [shape: f32[1,128], index: 1, kind: output, shape index: {}]  }
   0x1   :  { %v101_v0 = vld [vmem:[%s207_s0 + $0xf] sm:$0x1]   ;;  %v103_v1 = vld [vmem:[%s207_s0 + $0xd] sm:$0x1]   ;;  %v105_v2 = vld [vmem:[%s207_s0 + $0xb] sm:$0x1]  }
   0x2   :  { %7 = vrot.lane.b32.xlu0 %v101_v0, %s131_s10  ;;  %19 = vrot.lane.b32.xlu1 %v103_v1, %s132_s11  ;;  %s133_s14 = smov 88   ;;  %v102_v3 = vld [vmem:[%s207_s0 + $0xe] sm:$0x1]   ;;  %v104_v4 = vld [vmem:[%s207_s0 + $0xc] sm:$0x1]   ;;  %s134_s19 = smov 112  }
   0x3   :  { %31 = vrot.lane.b32.xlu2 %v105_v2, %s133_s14  ;;  %s135_s20 = smov 96   ;;  %v106_v5 = vld [vmem:[%s207_s0 + $0xa] sm:$0x1]   ;;  %s136_s23 = smov 80   ;;  %v107_v6 = vld [vmem:[%s207_s0 + $0x9] sm:$0x1]  }
   0x4   :  { %v108_v7 = vld [vmem:[%s207_s0 + $0x8] sm:$0x1]   ;;  %s137_s28 = smov 72   ;;  %s138_s29 = smov 64   ;;  %v109_v8 = vld [vmem:[%s207_s0 + $0x7] sm:$0x1]  }
   0x5   :  { %s139_s3 = smov 56   ;;  %v110_v9 = vld [vmem:[%s207_s0 + $0x6] sm:$0x1]   ;;  %v111_v10 = vld [vmem:[%s207_s0 + $0x5] sm:$0x1]   ;;  %s140_s8 = smov 48  }
   0x6   :  { %s141_s9 = smov 40   ;;  %v112_v11 = vld [vmem:[%s207_s0 + $0x4] sm:$0x1]   ;;  %s142_s12 = smov 32   ;;  %v113_v12 = vld [vmem:[%s207_s0 + $0x3] sm:$0x1]  }
   0x7   :  { %v114_v13 = vld [vmem:[%s207_s0 + $0x2] sm:$0x1]   ;;  %s143_s17 = smov 24   ;;  %s144_s18 = smov 16   ;;  %v115_v14 = vld [vmem:[%s207_s0 + $0x1] sm:$0x1]  }
   0x8   :  { %s145_s21 = smov 8   ;;  %v2_v15 = vld [vmem:[%s207_s0] sm:$0x1]   ;;  %vm27_vm4 = vcmask 851712   ;;  %vm33_vm5 = vcmask 786112   ;;  %vm39_vm6 = vcmask 720512  }
   0x9   :  { %4 = vst.msk [vmem:[#allocation0] sm:$0x1] %vm3_vm0, %v2_v15   ;;  %vm45_vm7 = vcmask 654912   ;;  %vm51_vm8 = vcmask 589312   ;;  %vm57_vm9 = vcmask 523712   ;;  %vm63_vm10 = vcmask 458112  }
   0xa   :  { %13 = vrot.lane.b32.xlu0 %v102_v3, %s134_s19  ;;  %25 = vrot.lane.b32.xlu1 %v104_v4, %s135_s20  ;;  %vm69_vm11 = vcmask 392512   ;;  %vm75_vm12 = vcmask 326912   ;;  %vm81_vm13 = vcmask 261312   ;;  %vm87_vm14 = vcmask 195712  }
   0xb   :  { %37 = vrot.lane.b32.xlu2 %v106_v5, %s136_s23  ;;  %vm93_vm15 = vcmask 130112  }
  0x12   :  { %43 = vrot.lane.b32.xlu0 %v107_v6, %s137_s28  ;;  %49 = vrot.lane.b32.xlu1 %v108_v7, %s138_s29 }
  0x13   :  { %55 = vrot.lane.b32.xlu2 %v109_v8, %s139_s3 }
  0x1a   :  { %61 = vrot.lane.b32.xlu0 %v110_v9, %s140_s8  ;;  %67 = vrot.lane.b32.xlu1 %v111_v10, %s141_s9 }
  0x1b   :  { %73 = vrot.lane.b32.xlu2 %v112_v11, %s142_s12 }
  0x22   :  { %79 = vrot.lane.b32.xlu0 %v113_v12, %s143_s17  ;;  %85 = vrot.lane.b32.xlu1 %v114_v13, %s144_s18 }
  0x23   :  { %91 = vrot.lane.b32.xlu2 %v115_v14, %s145_s21 }
  0x5d   :  { %v32_v16 = vpop.permute.xlu2 %31  }
  0x65   :  { %v38_v17 = vpop.permute.xlu2 %37  }
  0x6d   :  { %v56_v18 = vpop.permute.xlu2 %55  }
  0x74   :  { %v8_v19 = vpop.permute.xlu0 %7   ;;  %v20_v20 = vpop.permute.xlu1 %19  }
  0x75   :  { %10 = vst.msk [vmem:[#allocation0] sm:$0x1] %vm9_vm1, %v8_v19   ;;  %v74_v21 = vpop.permute.xlu2 %73  }
  0x7c   :  { %v14_v22 = vpop.permute.xlu0 %13   ;;  %v26_v23 = vpop.permute.xlu1 %25  }
  0x7d   :  { %16 = vst.msk [vmem:[#allocation0] sm:$0x1] %vm15_vm2, %v14_v22   ;;  %v92_v24 = vpop.permute.xlu2 %91  }
  0x7e   :  { %22 = vst.msk [vmem:[#allocation0] sm:$0x1] %vm21_vm3, %v20_v20  }
  0x7f   :  { %28 = vst.msk [vmem:[#allocation0] sm:$0x1] %vm27_vm4, %v26_v23  }
  0x80   :  { %34 = vst.msk [vmem:[#allocation0] sm:$0x1] %vm33_vm5, %v32_v16  }
  0x81   :  { %40 = vst.msk [vmem:[#allocation0] sm:$0x1] %vm39_vm6, %v38_v17  }
  0x84   :  { %v44_v25 = vpop.permute.xlu0 %43   ;;  %v50_v26 = vpop.permute.xlu1 %49  }
  0x85   :  { %46 = vst.msk [vmem:[#allocation0] sm:$0x1] %vm45_vm7, %v44_v25  }
  0x86   :  { %52 = vst.msk [vmem:[#allocation0] sm:$0x1] %vm51_vm8, %v50_v26  }
  0x87   :  { %58 = vst.msk [vmem:[#allocation0] sm:$0x1] %vm57_vm9, %v56_v18  }
  0x8c   :  { %v62_v27 = vpop.permute.xlu0 %61   ;;  %v68_v28 = vpop.permute.xlu1 %67  }
  0x8d   :  { %64 = vst.msk [vmem:[#allocation0] sm:$0x1] %vm63_vm10, %v62_v27  }
  0x8e   :  { %70 = vst.msk [vmem:[#allocation0] sm:$0x1] %vm69_vm11, %v68_v28  }
  0x8f   :  { %76 = vst.msk [vmem:[#allocation0] sm:$0x1] %vm75_vm12, %v74_v21  }
  0x94   :  { %v80_v29 = vpop.permute.xlu0 %79   ;;  %v86_v30 = vpop.permute.xlu1 %85  }
  0x95   :  { %82 = vst.msk [vmem:[#allocation0] sm:$0x1] %vm81_vm13, %v80_v29  }
  0x96   :  { %88 = vst.msk [vmem:[#allocation0] sm:$0x1] %vm87_vm14, %v86_v30  }
  0x97   :  { %94 = vst.msk [vmem:[#allocation0] sm:$0x1] %vm93_vm15, %v92_v24  }
  0x9e   :  { %v97_v31 = vld [vmem:[#allocation0] sm:$0x1] }
  0x9f   :  { %100 = vst [vmem:[%s208_s1] sm:$0x1] %v97_v31 }

// kernel: double_conv.1
= control target key start
LH: loop header
LB: loop body
LE: loop exit
PB: predicated region body
PF: predicated region fallthrough
CT: control target
= control target key end

     0   :  { %v26_v5 = vlaneseq  ;;  %vm152_vm3 = vcmask 523264   ;;  %s722_s11 = smov 32   ;;  %s723_s12 = smov 64   ;;  %s1150_s1 = inlined_call_operand.vmem [shape: f32[3,64,128], index: 1, kind: input, shape index: {}]   ;;  %s1151_s0 = inlined_call_operand.vmem [shape: f32[32,64], index: 0, kind: input, shape index: {}]   ;;  %s1152_s4 = inlined_call_operand.vmem [shape: f32[1,128], index: 4, kind: input, shape index: {}]   ;;  %s1153_s2 = inlined_call_operand.vmem [shape: f32[3,128,128], index: 2, kind: input, shape index: {}]   ;;  %s1154_s3 = inlined_call_operand.vmem [shape: f32[1,128], index: 3, kind: input, shape index: {}]   ;;  %s1155_s6 = inlined_call_operand.vmem [shape: f32[1,128], index: 6, kind: input, shape index: {}]   ;;  %s1156_s5 = inlined_call_operand.vmem [shape: f32[1,128], index: 5, kind: input, shape index: {}]   ;;  %s1157_s7 = inlined_call_operand.vmem [shape: f32[32,128], index: 7, kind: output, shape index: {}]  }
   0x1   :  { %v653_v0 = vld [vmem:[%s1150_s1 + $0xb8] sm:$0xff]  ;;  %v652_v1 = vld [vmem:[%s1150_s1 + $0xb0] sm:$0xff]  ;;  %v651_v6 = vld [vmem:[%s1150_s1 + $0xa8] sm:$0xff] }
   0x2   :  { %v151_v2 = vld [vmem:[%s1150_s1 + $0x38] sm:$0xff]  ;;  %264 = vmatpush.msra.mxu2 %v653_v0  ;;  %v150_v4 = vld [vmem:[%s1150_s1 + $0x30] sm:$0xff]  ;;  %v149_v8 = vld [vmem:[%s1150_s1 + $0x28] sm:$0xff]  ;;  %v800_v13 = vshrl.u32 %v26_v5, 7 }
   0x3   :  { %173 = vmatpush.msra.mxu0 %v151_v2  ;;  %v637_v3 = vld [vmem:[%s1150_s1 + $0x78] sm:$0xff]  ;;  %v636_v7 = vld [vmem:[%s1150_s1 + $0x70] sm:$0xff]  ;;  %v635_v9 = vld [vmem:[%s1150_s1 + $0x68] sm:$0xff] }
   0x4   :  { %214 = vmatpush.msra.mxu1 %v637_v3  ;;  %265 = vmatpush.msra.mxu2 %v652_v1  ;;  %v650_v10 = vld [vmem:[%s1150_s1 + $0xa0] sm:$0xff]  ;;  %v649_v14 = vld [vmem:[%s1150_s1 + $0x98] sm:$0xff]  ;;  %v88_v18 = vld [vmem:[%s1151_s0 + $0x8] sm:$0xff]  ;;  %v35_v19 = vand.u32 15, %v800_v13  ;;  %vm97_vm0 = vcmp.lt.s32.totalorder %v800_v13, 1  ;;  %vm118_vm1 = vcmp.lt.s32.totalorder %v800_v13, 7 }
   0x5   :  { %174 = vmatpush.msra.mxu0 %v150_v4  ;;  %v148_v11 = vld [vmem:[%s1150_s1 + $0x20] sm:$0xff]  ;;  %v147_v15 = vld [vmem:[%s1150_s1 + $0x18] sm:$0xff]  ;;  %v648_v21 = vld [vmem:[%s1150_s1 + $0x90] sm:$0xff]  ;;  %v115_v26 = vrot.slane %v88_v18, 1  ;;  %v28_v30 = vadd.s32 8, %v800_v13  ;;  %v94_v44 = vrot.slane %v88_v18, 7 }
   0x6   :  { %215 = vmatpush.msra.mxu1 %v636_v7  ;;  %266 = vmatpush.msra.mxu2 %v651_v6  ;;  %v634_v12 = vld [vmem:[%s1150_s1 + $0x60] sm:$0xff]  ;;  %v633_v17 = vld [vmem:[%s1150_s1 + $0x58] sm:$0xff]  ;;  %v146_v22 = vld [vmem:[%s1150_s1 + $0x10] sm:$0xff]  ;;  %vm849_vm2 = vcmp.ne.s32.totalorder %v35_v19, 0  ;;  %v29_v45 = vadd.s32 16, %v800_v13  ;;  %v30_v51 = vadd.s32 24, %v800_v13 }
   0x7   :  { %175 = vmatpush.msra.mxu0 %v149_v8  ;;  %v811_v16 = vld [vmem:[%s1151_s0] sm:$0xff]  ;;  %v830_v23 = vld [vmem:[%s1151_s0 + $0x18] sm:$0xff]  ;;  %v632_v24 = vld [vmem:[%s1150_s1 + $0x50] sm:$0xff]  ;;  %v42_v40 = vand.u32 15, %v28_v30 }
   0x8   :  { %216 = vmatpush.msra.mxu1 %v635_v9  ;;  %267 = vmatpush.msra.mxu2 %v650_v10  ;;  %v93_v20 = vrot.slane %v811_v16, 7  ;;  %v114_v25 = vrot.slane %v811_v16, 1  ;;  %v96_v27 = vrot.slane %v830_v23, 7  ;;  %v647_v28 = vld [vmem:[%s1150_s1 + $0x88] sm:$0xff]  ;;  %v89_v34 = vld [vmem:[%s1151_s0 + $0x10] sm:$0xff]  ;;  %v646_v35 = vld [vmem:[%s1150_s1 + $0x80] sm:$0xff] }
   0x9   :  { %176 = vmatpush.msra.mxu0 %v148_v11  ;;  %v145_v29 = vld [vmem:[%s1150_s1 + $0x8] sm:$0xff]  ;;  %v144_v36 = vld [vmem:[%s1150_s1] sm:$0xff]  ;;  %v116_v41 = vrot.slane %v89_v34, 1  ;;  %vm875_vm4 = vcmp.ne.s32.totalorder %v42_v40, 15  ;;  %v49_v48 = vand.u32 15, %v29_v45  ;;  %v95_v49 = vrot.slane %v89_v34, 7 }
   0xa   :  { %217 = vmatpush.msra.mxu1 %v634_v12  ;;  %268 = vmatpush.msra.mxu2 %v649_v14  ;;  %v631_v31 = vld [vmem:[%s1150_s1 + $0x48] sm:$0xff]  ;;  %v101_v33 = vsel %vm97_vm0, %v96_v27, %v93_v20  ;;  %v121_v37 = vsel %vm118_vm1, %v114_v25, %v115_v26  ;;  %v630_v38 = vld [vmem:[%s1150_s1 + $0x40] sm:$0xff]  ;;  %v100_v47 = vsel %vm97_vm0, %v93_v20, %v94_v44  ;;  %v117_v50 = vrot.slane %v830_v23, 1  ;;  %s720_s0 = smov 8   ;;  %s721_s1 = smov 16  }
   0xb   :  { %177 = vmatpush.msra.mxu0 %v147_v15  ;;  %v110_v39 = vsel %vm849_vm2, %v101_v33, 0.0  ;;  %v120_v43 = vsel %vm118_vm1, %v115_v26, %v116_v41  ;;  %vm891_vm5 = vcmp.ne.s32.totalorder %v49_v48, 0  ;;  %v99_v53 = vsel %vm97_vm0, %v94_v44, %v95_v49 }
   0xc   :  { %218 = vmatpush.msra.mxu1 %v633_v17  ;;  %269 = vmatpush.msra.mxu2 %v648_v21  ;;  %v132_v46 = vsel %vm875_vm4, %v120_v43, 0.0  ;;  %v119_v54 = vsel %vm118_vm1, %v116_v41, %v117_v50  ;;  %v112_v55 = vsel %vm891_vm5, %v99_v53, 0.0  ;;  %v56_v56 = vand.u32 15, %v30_v51 }
   0xd   :  { %178 = vmatpush.msra.mxu0 %v146_v22  ;;  %v122_v58 = vsel %vm118_vm1, %v117_v50, %v114_v25  ;;  %v98_v60 = vsel %vm97_vm0, %v95_v49, %v96_v27 }
   0xe   :  { %219 = vmatpush.msra.mxu1 %v632_v24  ;;  %270 = vmatpush.msra.mxu2 %v647_v28  ;;  %vm904_vm6 = vcmp.ne.s32.totalorder %v56_v56, 15 }
   0xf   :  { %179 = vmatpush.msra.mxu0 %v145_v29  ;;  %v134_v59 = vsel %vm904_vm6, %v122_v58, 0.0 }
  0x10   :  { %220 = vmatpush.msra.mxu1 %v631_v31  ;;  %271 = vmatpush.msra.mxu2 %v646_v35 }
  0x11   :  { %180 = vmatpush.msra.mxu0 %v144_v36  ;;  %654 = vmatmul.msk.f32.vlgmr.msra.gmra.mxu2 %vm152_vm3, %v121_v37 }
  0x12   :  { %221 = vmatpush.msra.mxu1 %v630_v38  ;;  %638 = vmatmul.msk.f32.vlgmr.msra.gmra.mxu0 %vm152_vm3, %v110_v39 }
  0x13   :  { %642 = vmatmul.msk.f32.vlgmr.msra.gmra.mxu1 %vm152_vm3, %v811_v16 }
  0x19   :  { %655 = vmatmul.msk.f32.gmra.mxu2 %vm152_vm3, %v132_v46 }
  0x1a   :  { %639 = vmatmul.msk.f32.gmra.mxu0 %vm152_vm3, %v100_v47 }
  0x1b   :  { %643 = vmatmul.msk.f32.gmra.mxu1 %vm152_vm3, %v88_v18 }
  0x21   :  { %656 = vmatmul.msk.f32.gmra.mxu2 %vm152_vm3, %v119_v54 }
  0x22   :  { %640 = vmatmul.msk.f32.gmra.mxu0 %vm152_vm3, %v112_v55 }
  0x23   :  { %644 = vmatmul.msk.f32.gmra.mxu1 %vm152_vm3, %v89_v34 }
  0x29   :  { %657 = vmatmul.msk.f32.gmra.mxu2 %vm152_vm3, %v134_v59 }
  0x2a   :  { %641 = vmatmul.msk.f32.gmra.mxu0 %vm152_vm3, %v98_v60 }
  0x2b   :  { %645 = vmatmul.msk.f32.gmra.mxu1 %vm152_vm3, %v830_v23 }
  0x8f   :  { %v182_v61 = vpop.f32.mrf.mxu0 }
  0x90   :  { %v223_v62 = vpop.f32.mrf.mxu1 }
  0x91   :  { %v224_v7 = vadd.f32 %v223_v62, %v182_v61 }
  0x94   :  { %v273_v63 = vpop.f32.mrf.mxu2 }
  0x95   :  { %v285_v12 = vadd.f32 %v273_v63, %v224_v7  ;;  %v670_v7 = vld [vmem:[%s1153_s2 + $0xe0] sm:$0xff] }
  0x97   :  { %v185_v0 = vpop.f32.mrf.mxu0 }
  0x98   :  { %v226_v1 = vpop.f32.mrf.mxu1 }
  0x99   :  { %v227_v5 = vadd.f32 %v226_v1, %v185_v0  ;;  %v673_v0 = vld [vmem:[%s1153_s2 + $0xf8] sm:$0xff]  ;;  %v672_v1 = vld [vmem:[%s1153_s2 + $0xf0] sm:$0xff] }
  0x9a   :  { %460 = vmatpush.msrb.mxu0 %v673_v0  ;;  %694 = vmatpush.msrb.mxu2 %v673_v0 }
  0x9c   :  { %v276_v2 = vpop.f32.mrf.mxu2  ;;  %461 = vmatpush.msrb.mxu0 %v672_v1  ;;  %695 = vmatpush.msrb.mxu2 %v672_v1 }
  0x9d   :  { %v286_v9 = vadd.f32 %v276_v2, %v227_v5  ;;  %v430_v2 = vld [vmem:[%s1153_s2 + $0x78] sm:$0xff]  ;;  %v429_v5 = vld [vmem:[%s1153_s2 + $0x70] sm:$0xff] }
  0x9e   :  { %431 = vmatpush.msra.mxu3 %v430_v2  ;;  %v91_v2 = vld [vmem:[%s1154_s3] sm:$0x1] }
  0x9f   :  { %v188_v3 = vpop.f32.mrf.mxu0  ;;  %v289_v16 = vadd.f32 %v286_v9, %v285_v12 }
  0xa0   :  { %v229_v4 = vpop.f32.mrf.mxu1  ;;  %432 = vmatpush.msra.mxu3 %v429_v5 }
  0xa1   :  { %v230_v8 = vadd.f32 %v229_v4, %v188_v3  ;;  %v691_v3 = vld [vmem:[%s1153_s2 + $0x178] sm:$0xff]  ;;  %v671_v4 = vld [vmem:[%s1153_s2 + $0xe8] sm:$0xff] }
  0xa2   :  { %506 = vmatpush.msrb.mxu1 %v691_v3  ;;  %462 = vmatpush.msrb.mxu0 %v671_v4 }
  0xa3   :  { %696 = vmatpush.msrb.mxu2 %v671_v4 }
  0xa4   :  { %v279_v6 = vpop.f32.mrf.mxu2  ;;  %463 = vmatpush.msrb.mxu0 %v670_v7 }
  0xa5   :  { %v287_v14 = vadd.f32 %v279_v6, %v230_v8  ;;  %v690_v6 = vld [vmem:[%s1153_s2 + $0x170] sm:$0xff]  ;;  %697 = vmatpush.msrb.mxu2 %v670_v7  ;;  %v428_v8 = vld [vmem:[%s1153_s2 + $0x68] sm:$0xff]  ;;  %v714_v7 = vld [vmem:[%s1152_s4] ss:$0 sm:$0xff] }
  0xa6   :  { %507 = vmatpush.msrb.mxu1 %v690_v6  ;;  %433 = vmatpush.msra.mxu3 %v428_v8 }
  0xa7   :  { %v191_v10 = vpop.f32.mrf.mxu0  ;;  %v290_v18 = vadd.f32 %v289_v16, %v287_v14  ;;  %v687_v16 = vld [vmem:[%s1153_s2 + $0x158] sm:$0xff] }
  0xa8   :  { %v232_v11 = vpop.f32.mrf.mxu1 }
  0xa9   :  { %v233_v15 = vadd.f32 %v232_v11, %v191_v10  ;;  %v669_v10 = vld [vmem:[%s1153_s2 + $0xd8] sm:$0xff]  ;;  %v427_v11 = vld [vmem:[%s1153_s2 + $0x60] sm:$0xff] }
  0xaa   :  { %464 = vmatpush.msrb.mxu0 %v669_v10  ;;  %698 = vmatpush.msrb.mxu2 %v669_v10 }
  0xab   :  { %434 = vmatpush.msra.mxu3 %v427_v11 }
  0xac   :  { %v282_v17 = vpop.f32.mrf.mxu2 }
  0xad   :  { %v288_v19 = vadd.f32 %v282_v17, %v233_v15  ;;  %v426_v15 = vld [vmem:[%s1153_s2 + $0x58] sm:$0xff]  ;;  %v667_v17 = vld [vmem:[%s1153_s2 + $0xc8] sm:$0xff] }
  0xae   :  { %435 = vmatpush.msra.mxu3 %v426_v15 }
  0xaf   :  { %v291_v20 = vadd.f32 %v290_v18, %v288_v19  ;;  %v425_v18 = vld [vmem:[%s1153_s2 + $0x50] sm:$0xff] }
  0xb0   :  { %436 = vmatpush.msra.mxu3 %v425_v18 }
  0xb1   :  { %v292_v21 = vrot.slane %v291_v20, 4 }
  0xb3   :  { %v293_v22 = vadd.f32 %v292_v21, %v291_v20  ;;  %v666_v20 = vld [vmem:[%s1153_s2 + $0xc0] sm:$0xff]  ;;  %v424_v21 = vld [vmem:[%s1153_s2 + $0x48] sm:$0xff] }
  0xb4   :  { %437 = vmatpush.msra.mxu3 %v424_v21 }
  0xb5   :  { %v294_v23 = vrot.slane %v293_v22, 2 }
  0xb7   :  { %v295_v24 = vadd.f32 %v294_v23, %v293_v22  ;;  %v685_v22 = vld [vmem:[%s1153_s2 + $0x148] sm:$0xff]  ;;  %v665_v23 = vld [vmem:[%s1153_s2 + $0xb8] sm:$0xff] }
  0xb9   :  { %v296_v25 = vrot.slane %v295_v24, 1 }
  0xbb   :  { %v297_v26 = vadd.f32 %v296_v25, %v295_v24  ;;  %v423_v24 = vld [vmem:[%s1153_s2 + $0x40] sm:$0xff] }
  0xbc   :  { %v684_v25 = vld [vmem:[%s1153_s2 + $0x140] sm:$0xff]  ;;  %438 = vmatpush.msra.mxu3 %v423_v24 }
  0xbd   :  { %298 = vrot.lane.b32.xlu0 %v297_v26, %s720_s0 }
 0x12f   :  { %v299_v27 = vpop.permute.xlu0 %298 }
 0x130   :  { %v300_v28 = vadd.f32 %v299_v27, %v297_v26  ;;  %v664_v26 = vld [vmem:[%s1153_s2 + $0xb0] sm:$0xff]  ;;  %v422_v27 = vld [vmem:[%s1153_s2 + $0x38] sm:$0xff] }
 0x131   :  { %439 = vmatpush.msra.mxu3 %v422_v27 }
 0x132   :  { %301 = vrot.lane.b32.xlu0 %v300_v28, %s721_s1 }
 0x1a4   :  { %v302_v29 = vpop.permute.xlu0 %301 }
 0x1a5   :  { %v303_v30 = vadd.f32 %v302_v29, %v300_v28  ;;  %v683_v28 = vld [vmem:[%s1153_s2 + $0x138] sm:$0xff]  ;;  %v663_v29 = vld [vmem:[%s1153_s2 + $0xa8] sm:$0xff] }
 0x1a7   :  { %304 = vrot.lane.b32.xlu1 %v303_v30, %s722_s11 }
 0x219   :  { %v305_v31 = vpop.permute.xlu1 %304 }
 0x21a   :  { %v306_v33 = vadd.f32 %v305_v31, %v303_v30  ;;  %v421_v30 = vld [vmem:[%s1153_s2 + $0x30] sm:$0xff] }
 0x21b   :  { %v682_v31 = vld [vmem:[%s1153_s2 + $0x130] sm:$0xff]  ;;  %440 = vmatpush.msra.mxu3 %v421_v30 }
 0x21c   :  { %307 = vrot.lane.b32.xlu1 %v306_v33, %s723_s12 }
 0x28e   :  { %v308_v34 = vpop.permute.xlu1 %307 }
 0x28f   :  { %v309_v35 = vadd.f32 %v308_v34, %v306_v33  ;;  %v662_v33 = vld [vmem:[%s1153_s2 + $0xa0] sm:$0xff]  ;;  %v420_v34 = vld [vmem:[%s1153_s2 + $0x28] sm:$0xff] }
 0x290   :  { %441 = vmatpush.msra.mxu3 %v420_v34 }
 0x291   :  { %v310_v36 = vmul.f32 0.001953125, %v309_v35  ;;  %v681_v35 = vld [vmem:[%s1153_s2 + $0x128] sm:$0xff] }
 0x293   :  { %v311_v37 = vperm.slane %v310_v36, 0  ;;  %v661_v36 = vld [vmem:[%s1153_s2 + $0x98] sm:$0xff] }
 0x295   :  { %v922_v38 = vsub.f32 %v285_v12, %v311_v37  ;;  %v924_v39 = vsub.f32 %v286_v9, %v311_v37  ;;  %v926_v40 = vsub.f32 %v287_v14, %v311_v37  ;;  %v928_v41 = vsub.f32 %v288_v19, %v311_v37  ;;  %v689_v9 = vld [vmem:[%s1153_s2 + $0x168] sm:$0xff]  ;;  %v688_v12 = vld [vmem:[%s1153_s2 + $0x160] sm:$0xff]  ;;  %v668_v14 = vld [vmem:[%s1153_s2 + $0xd0] sm:$0xff] }
 0x296   :  { %508 = vmatpush.msrb.mxu1 %v689_v9  ;;  %465 = vmatpush.msrb.mxu0 %v668_v14  ;;  %v686_v19 = vld [vmem:[%s1153_s2 + $0x150] sm:$0xff]  ;;  %v419_v37 = vld [vmem:[%s1153_s2 + $0x20] sm:$0xff] }
 0x297   :  { %v316_v43 = vmul.f32 %v922_v38, %v922_v38  ;;  %v317_v44 = vmul.f32 %v924_v39, %v924_v39  ;;  %v318_v45 = vmul.f32 %v926_v40, %v926_v40  ;;  %v319_v47 = vmul.f32 %v928_v41, %v928_v41  ;;  %699 = vmatpush.msrb.mxu2 %v668_v14 }
 0x298   :  { %509 = vmatpush.msrb.mxu1 %v688_v12  ;;  %466 = vmatpush.msrb.mxu0 %v667_v17 }
 0x299   :  { %v320_v46 = vadd.f32 %v317_v44, %v316_v43  ;;  %700 = vmatpush.msrb.mxu2 %v667_v17  ;;  %v680_v43 = vld [vmem:[%s1153_s2 + $0x120] sm:$0xff]  ;;  %v660_v44 = vld [vmem:[%s1153_s2 + $0x90] sm:$0xff]  ;;  %442 = vmatpush.msra.mxu3 %v419_v37 }
 0x29a   :  { %510 = vmatpush.msrb.mxu1 %v687_v16  ;;  %467 = vmatpush.msrb.mxu0 %v666_v20 }
 0x29b   :  { %v321_v48 = vadd.f32 %v320_v46, %v318_v45  ;;  %701 = vmatpush.msrb.mxu2 %v666_v20  ;;  %v418_v45 = vld [vmem:[%s1153_s2 + $0x18] sm:$0xff] }
 0x29c   :  { %511 = vmatpush.msrb.mxu1 %v686_v19  ;;  %468 = vmatpush.msrb.mxu0 %v665_v23  ;;  %v679_v46 = vld [vmem:[%s1153_s2 + $0x118] sm:$0xff] }
 0x29d   :  { %v322_v49 = vadd.f32 %v321_v48, %v319_v47  ;;  %702 = vmatpush.msrb.mxu2 %v665_v23  ;;  %v659_v47 = vld [vmem:[%s1153_s2 + $0x88] sm:$0xff]  ;;  %v417_v48 = vld [vmem:[%s1153_s2 + $0x10] sm:$0xff]  ;;  %443 = vmatpush.msra.mxu3 %v418_v45 }
 0x29e   :  { %512 = vmatpush.msrb.mxu1 %v685_v22  ;;  %469 = vmatpush.msrb.mxu0 %v664_v26 }
 0x29f   :  { %v323_v50 = vrot.slane %v322_v49, 4  ;;  %703 = vmatpush.msrb.mxu2 %v664_v26  ;;  %444 = vmatpush.msra.mxu3 %v417_v48 }
 0x2a0   :  { %513 = vmatpush.msrb.mxu1 %v684_v25  ;;  %470 = vmatpush.msrb.mxu0 %v663_v29 }
 0x2a1   :  { %v324_v51 = vadd.f32 %v323_v50, %v322_v49  ;;  %704 = vmatpush.msrb.mxu2 %v663_v29  ;;  %v678_v49 = vld [vmem:[%s1153_s2 + $0x110] sm:$0xff]  ;;  %v658_v50 = vld [vmem:[%s1153_s2 + $0x80] sm:$0xff] }
 0x2a2   :  { %514 = vmatpush.msrb.mxu1 %v683_v28  ;;  %471 = vmatpush.msrb.mxu0 %v662_v33 }
 0x2a3   :  { %v325_v53 = vrot.slane %v324_v51, 2  ;;  %705 = vmatpush.msrb.mxu2 %v662_v33 }
 0x2a4   :  { %515 = vmatpush.msrb.mxu1 %v682_v31  ;;  %472 = vmatpush.msrb.mxu0 %v661_v36 }
 0x2a5   :  { %v326_v54 = vadd.f32 %v325_v53, %v324_v51  ;;  %706 = vmatpush.msrb.mxu2 %v661_v36  ;;  %v416_v53 = vld [vmem:[%s1153_s2 + $0x8] sm:$0xff] }
 0x2a6   :  { %516 = vmatpush.msrb.mxu1 %v681_v35  ;;  %473 = vmatpush.msrb.mxu0 %v660_v44 }
 0x2a7   :  { %v327_v55 = vrot.slane %v326_v54, 1  ;;  %707 = vmatpush.msrb.mxu2 %v660_v44  ;;  %445 = vmatpush.msra.mxu3 %v416_v53 }
 0x2a8   :  { %517 = vmatpush.msrb.mxu1 %v680_v43  ;;  %474 = vmatpush.msrb.mxu0 %v659_v47 }
 0x2a9   :  { %v328_v56 = vadd.f32 %v327_v55, %v326_v54  ;;  %708 = vmatpush.msrb.mxu2 %v659_v47  ;;  %v677_v55 = vld [vmem:[%s1153_s2 + $0x108] sm:$0xff] }
 0x2aa   :  { %518 = vmatpush.msrb.mxu1 %v679_v46  ;;  %475 = vmatpush.msrb.mxu0 %v658_v50 }
 0x2ab   :  { %329 = vrot.lane.b32.xlu2 %v328_v56, %s720_s0  ;;  %709 = vmatpush.msrb.mxu2 %v658_v50 }
 0x2ac   :  { %519 = vmatpush.msrb.mxu1 %v678_v49 }
 0x2ae   :  { %520 = vmatpush.msrb.mxu1 %v677_v55 }
 0x305   :  { %v330_v58 = vpop.permute.xlu2 %329 }
 0x306   :  { %v331_v59 = vadd.f32 %v330_v58, %v328_v56  ;;  %v415_v58 = vld [vmem:[%s1153_s2] sm:$0xff] }
 0x307   :  { %446 = vmatpush.msra.mxu3 %v415_v58 }
 0x308   :  { %332 = vrot.lane.b32.xlu2 %v331_v59, %s721_s1 }
 0x362   :  { %v333_v60 = vpop.permute.xlu2 %332 }
 0x363   :  { %v334_v61 = vadd.f32 %v333_v60, %v331_v59  ;;  %v676_v59 = vld [vmem:[%s1153_s2 + $0x100] sm:$0xff] }
 0x364   :  { %521 = vmatpush.msrb.mxu1 %v676_v59 }
 0x365   :  { %335 = vrot.lane.b32.xlu0 %v334_v61, %s722_s11 }
 0x3d7   :  { %v336_v62 = vpop.permute.xlu0 %335 }
 0x3d8   :  { %v941_v63 = vadd.f32 %v336_v62, %v334_v61 }
 0x3da   :  { %338 = vrot.lane.b32.xlu1 %v941_v63, %s723_s12 }
 0x44c   :  { %v339_v51 = vpop.permute.xlu1 %338 }
 0x44d   :  { %v340_v54 = vadd.f32 %v339_v51, %v941_v63 }
 0x44f   :  { %v341_v56 = vmul.f32 0.001953125, %v340_v54 }
 0x451   :  { %v342_v60 = vadd.f32 1e-05, %v341_v56 }
 0x453   :  { %716 = vrsqrt.f32 %v342_v60  ;;  %vm349_vm8 = vweird.f32 %v342_v60 }
 0x459   :  { %v717_v61 = vpop.eup %716 }
 0x45a   :  { %v344_v62 = vmul.f32 %v717_v61, %v342_v60  ;;  %vm350_vm7 = vweird.f32 %v717_v61 }
 0x45b   :  { %vm351_vm9 = vmor %vm349_vm8, %vm350_vm7 }
 0x45c   :  { %v345_v63 = vmul.f32 %v717_v61, %v344_v62 }
 0x45e   :  { %v346_v0 = vmul.f32 0.5, %v345_v63 }
 0x460   :  { %v347_v1 = vsub.f32 1.5, %v346_v0 }
 0x462   :  { %v348_v3 = vmul.f32 %v717_v61, %v347_v1 }
 0x464   :  { %v352_v4 = vsel %vm351_vm9, %v717_v61, %v348_v3 }
 0x465   :  { %v353_v5 = vmul.f32 %v352_v4, %v91_v2 }
 0x467   :  { %v355_v6 = vperm.slane %v353_v5, 0 }
 0x469   :  { %v357_v8 = vmul.f32 %v355_v6, %v922_v38  ;;  %v358_v9 = vmul.f32 %v355_v6, %v924_v39  ;;  %v360_v10 = vmul.f32 %v355_v6, %v928_v41  ;;  %v359_v11 = vmul.f32 %v355_v6, %v926_v40 }
 0x46b   :  { %v364_v12 = vadd.f32 %v714_v7, %v357_v8  ;;  %v365_v14 = vadd.f32 %v714_v7, %v358_v9  ;;  %v367_v15 = vadd.f32 %v714_v7, %v360_v10  ;;  %v366_v19 = vadd.f32 %v714_v7, %v359_v11 }
 0x46d   :  { %v368_v16 = vmax.f32 %v364_v12, 0.0  ;;  %v369_v17 = vmax.f32 %v365_v14, 0.0  ;;  %v371_v18 = vmax.f32 %v367_v15, 0.0  ;;  %v370_v40 = vmax.f32 %v366_v19, 0.0 }
 0x46f   :  { %476 = vmatmul.f32.vlgmr.msrb.gmra.mxu0 %v368_v16  ;;  %479 = vmatmul.f32.vlgmr.msrb.gmra.mxu2 %v369_v17  ;;  %v374_v20 = vrot.slane %v368_v16, 7  ;;  %v377_v21 = vrot.slane %v371_v18, 7  ;;  %v386_v22 = vrot.slane %v368_v16, 1  ;;  %v387_v23 = vrot.slane %v369_v17, 1 }
 0x470   :  { %v375_v41 = vrot.slane %v369_v17, 7  ;;  %v388_v24 = vrot.slane %v370_v40, 1  ;;  %v376_v27 = vrot.slane %v370_v40, 7  ;;  %v389_v28 = vrot.slane %v371_v18, 1 }
 0x471   :  { %v381_v38 = vsel %vm97_vm0, %v377_v21, %v374_v20  ;;  %v392_v39 = vsel %vm118_vm1, %v386_v22, %v387_v23 }
 0x472   :  { %674 = vmatmul.msk.f32.vlgmr.msra.gmra.mxu3 %vm849_vm2, %v381_v38  ;;  %522 = vmatmul.f32.vlgmr.msrb.gmra.mxu1 %v392_v39  ;;  %v380_v25 = vsel %vm97_vm0, %v374_v20, %v375_v41  ;;  %v391_v26 = vsel %vm118_vm1, %v387_v23, %v388_v24  ;;  %v379_v32 = vsel %vm97_vm0, %v375_v41, %v376_v27 }
 0x473   :  { %v390_v29 = vsel %vm118_vm1, %v388_v24, %v389_v28  ;;  %v378_v30 = vsel %vm97_vm0, %v376_v27, %v377_v21  ;;  %v393_v42 = vsel %vm118_vm1, %v389_v28, %v386_v22 }
 0x477   :  { %482 = vmatmul.f32.gmra.mxu2 %v370_v40 }
 0x47a   :  { %450 = vmatmul.f32.gmra.mxu3 %v380_v25  ;;  %692 = vmatmul.msk.f32.gmra.mxu1 %vm875_vm4, %v391_v26 }
 0x47f   :  { %485 = vmatmul.f32.gmra.mxu2 %v371_v18 }
 0x482   :  { %675 = vmatmul.msk.f32.gmra.mxu3 %vm891_vm5, %v379_v32  ;;  %528 = vmatmul.f32.gmra.mxu1 %v390_v29 }
 0x48a   :  { %456 = vmatmul.f32.gmra.mxu3 %v378_v30  ;;  %693 = vmatmul.msk.f32.gmra.mxu1 %vm904_vm6, %v393_v42 }
 0x4ec   :  { %v477_v45 = vpop.f32.mrf.mxu0 }
 0x4ef   :  { %v523_v31 = vpop.f32.mrf.mxu1 }
 0x4f2   :  { %v480_v34 = vpop.f32.mrf.mxu2 }
 0x4f5   :  { %v448_v33 = vpop.f32.mrf.mxu3 }
 0x4f6   :  { %v478_v46 = vadd.f32 %v477_v45, %v448_v33 }
 0x4f7   :  { %v526_v35 = vpop.f32.mrf.mxu1 }
 0x4f8   :  { %v535_v49 = vadd.f32 %v523_v31, %v478_v46 }
 0x4fa   :  { %v483_v37 = vpop.f32.mrf.mxu2 }
 0x4fd   :  { %v451_v36 = vpop.f32.mrf.mxu3 }
 0x4fe   :  { %v481_v44 = vadd.f32 %v480_v34, %v451_v36 }
 0x4ff   :  { %v529_v43 = vpop.f32.mrf.mxu1 }
 0x500   :  { %v536_v48 = vadd.f32 %v526_v35, %v481_v44 }
 0x502   :  { %v486_v50 = vpop.f32.mrf.mxu2  ;;  %v539_v53 = vadd.f32 %v536_v48, %v535_v49 }
 0x505   :  { %v454_v52 = vpop.f32.mrf.mxu3 }
 0x506   :  { %v484_v47 = vadd.f32 %v483_v37, %v454_v52  ;;  %v372_v52 = vld [vmem:[%s1156_s5] sm:$0x1] }
 0x507   :  { %v532_v54 = vpop.f32.mrf.mxu1 }
 0x508   :  { %v537_v13 = vadd.f32 %v529_v43, %v484_v47  ;;  %v715_v47 = vld [vmem:[%s1155_s6] ss:$0 sm:$0xff] }
 0x50a   :  { %v540_v55 = vadd.f32 %v539_v53, %v537_v13 }
 0x50d   :  { %v457_v51 = vpop.f32.mrf.mxu3 }
 0x50e   :  { %v487_v57 = vadd.f32 %v486_v50, %v457_v51 }
 0x510   :  { %v538_v56 = vadd.f32 %v532_v54, %v487_v57 }
 0x512   :  { %v541_v58 = vadd.f32 %v540_v55, %v538_v56 }
 0x514   :  { %v542_v59 = vrot.slane %v541_v58, 4 }
 0x516   :  { %v543_v60 = vadd.f32 %v542_v59, %v541_v58 }
 0x518   :  { %v544_v61 = vrot.slane %v543_v60, 2 }
 0x51a   :  { %v545_v62 = vadd.f32 %v544_v61, %v543_v60 }
 0x51c   :  { %v546_v63 = vrot.slane %v545_v62, 1 }
 0x51e   :  { %v547_v0 = vadd.f32 %v546_v63, %v545_v62 }
 0x520   :  { %548 = vrot.lane.b32.xlu2 %v547_v0, %s720_s0 }
 0x57a   :  { %v549_v1 = vpop.permute.xlu2 %548 }
 0x57b   :  { %v550_v2 = vadd.f32 %v549_v1, %v547_v0 }
 0x57d   :  { %551 = vrot.lane.b32.xlu0 %v550_v2, %s721_s1 }
 0x5ef   :  { %v552_v3 = vpop.permute.xlu0 %551 }
 0x5f0   :  { %v553_v4 = vadd.f32 %v552_v3, %v550_v2 }
 0x5f2   :  { %554 = vrot.lane.b32.xlu1 %v553_v4, %s722_s11 }
 0x664   :  { %v555_v5 = vpop.permute.xlu1 %554 }
 0x665   :  { %v556_v6 = vadd.f32 %v555_v5, %v553_v4 }
 0x667   :  { %557 = vrot.lane.b32.xlu2 %v556_v6, %s723_s12 }
 0x6c1   :  { %v558_v7 = vpop.permute.xlu2 %557 }
 0x6c2   :  { %v559_v8 = vadd.f32 %v558_v7, %v556_v6 }
 0x6c4   :  { %v560_v9 = vmul.f32 0.001953125, %v559_v8 }
 0x6c6   :  { %v561_v10 = vperm.slane %v560_v9, 0 }
 0x6c8   :  { %v562_v11 = vsub.f32 %v535_v49, %v561_v10  ;;  %v563_v12 = vsub.f32 %v536_v48, %v561_v10  ;;  %v564_v14 = vsub.f32 %v537_v13, %v561_v10  ;;  %v565_v15 = vsub.f32 %v538_v56, %v561_v10 }
 0x6ca   :  { %v566_v16 = vmul.f32 %v562_v11, %v562_v11  ;;  %v567_v17 = vmul.f32 %v563_v12, %v563_v12  ;;  %v568_v18 = vmul.f32 %v564_v14, %v564_v14  ;;  %v569_v20 = vmul.f32 %v565_v15, %v565_v15 }
 0x6cc   :  { %v570_v19 = vadd.f32 %v567_v17, %v566_v16 }
 0x6ce   :  { %v571_v21 = vadd.f32 %v570_v19, %v568_v18 }
 0x6d0   :  { %v572_v22 = vadd.f32 %v571_v21, %v569_v20 }
 0x6d2   :  { %v573_v23 = vrot.slane %v572_v22, 4 }
 0x6d4   :  { %v574_v38 = vadd.f32 %v573_v23, %v572_v22 }
 0x6d6   :  { %v575_v39 = vrot.slane %v574_v38, 2 }
 0x6d8   :  { %v576_v40 = vadd.f32 %v575_v39, %v574_v38 }
 0x6da   :  { %v577_v41 = vrot.slane %v576_v40, 1 }
 0x6dc   :  { %v578_v24 = vadd.f32 %v577_v41, %v576_v40 }
 0x6de   :  { %579 = vrot.lane.b32.xlu0 %v578_v24, %s720_s0 }
 0x750   :  { %v580_v25 = vpop.permute.xlu0 %579 }
 0x751   :  { %v581_v26 = vadd.f32 %v580_v25, %v578_v24 }
 0x753   :  { %582 = vrot.lane.b32.xlu1 %v581_v26, %s721_s1 }
 0x7c5   :  { %v583_v27 = vpop.permute.xlu1 %582 }
 0x7c6   :  { %v584_v28 = vadd.f32 %v583_v27, %v581_v26 }
 0x7c8   :  { %585 = vrot.lane.b32.xlu2 %v584_v28, %s722_s11 }
 0x822   :  { %v586_v32 = vpop.permute.xlu2 %585 }
 0x823   :  { %v587_v29 = vadd.f32 %v586_v32, %v584_v28 }
 0x825   :  { %588 = vrot.lane.b32.xlu0 %v587_v29, %s723_s12 }
 0x897   :  { %v589_v30 = vpop.permute.xlu0 %588 }
 0x898   :  { %v590_v42 = vadd.f32 %v589_v30, %v587_v29 }
 0x89a   :  { %v591_v31 = vmul.f32 0.001953125, %v590_v42 }
 0x89c   :  { %v592_v33 = vadd.f32 1e-05, %v591_v31 }
 0x89e   :  { %718 = vrsqrt.f32 %v592_v33  ;;  %vm599_vm11 = vweird.f32 %v592_v33 }
 0x8a4   :  { %v719_v34 = vpop.eup %718 }
 0x8a5   :  { %v594_v35 = vmul.f32 %v719_v34, %v592_v33  ;;  %vm600_vm10 = vweird.f32 %v719_v34 }
 0x8a6   :  { %vm601_vm12 = vmor %vm599_vm11, %vm600_vm10 }
 0x8a7   :  { %v595_v36 = vmul.f32 %v719_v34, %v594_v35 }
 0x8a9   :  { %v596_v37 = vmul.f32 0.5, %v595_v36 }
 0x8ab   :  { %v597_v43 = vsub.f32 1.5, %v596_v37 }
 0x8ad   :  { %v598_v44 = vmul.f32 %v719_v34, %v597_v43 }
 0x8af   :  { %v602_v45 = vsel %vm601_vm12, %v719_v34, %v598_v44 }
 0x8b0   :  { %v603_v46 = vmul.f32 %v602_v45, %v372_v52 }
 0x8b2   :  { %v605_v48 = vperm.slane %v603_v46, 0 }
 0x8b4   :  { %v607_v49 = vmul.f32 %v605_v48, %v562_v11  ;;  %v608_v13 = vmul.f32 %v605_v48, %v563_v12  ;;  %v609_v50 = vmul.f32 %v605_v48, %v564_v14  ;;  %v610_v51 = vmul.f32 %v605_v48, %v565_v15 }
 0x8b6   :  { %v614_v53 = vadd.f32 %v715_v47, %v607_v49  ;;  %v615_v57 = vadd.f32 %v715_v47, %v608_v13  ;;  %v616_v54 = vadd.f32 %v715_v47, %v609_v50  ;;  %v617_v55 = vadd.f32 %v715_v47, %v610_v51 }
 0x8b8   :  { %v618_v56 = vmax.f32 %v614_v53, 0.0  ;;  %v619_v58 = vmax.f32 %v615_v57, 0.0  ;;  %v620_v59 = vmax.f32 %v616_v54, 0.0  ;;  %v621_v60 = vmax.f32 %v617_v55, 0.0 }
 0x8ba   :  { %622 = vst [vmem:[%s1157_s7] sm:$0xff] %v618_v56 }
 0x8bb   :  { %623 = vst [vmem:[%s1157_s7 + $0x8] sm:$0xff] %v619_v58 }
 0x8bc   :  { %624 = vst [vmem:[%s1157_s7 + $0x10] sm:$0xff] %v620_v59 }
 0x8bd   :  { %625 = vst [vmem:[%s1157_s7 + $0x18] sm:$0xff] %v621_v60 }

</bundles_post_ra>
